<compile_context>
chip_gen: v7x
topology: tpu7x:2x2x1
jax: 0.10.0
libtpu: 0.0.40
codegen_flags: <defaults>
</compile_context>

<pallas_src>
import functools

import jax
import jax.numpy as jnp
from jax.experimental import pallas as pl
from jax.experimental.pallas import tpu as pltpu

EPS = 1e-7      # GENConv message epsilon
BN_EPS = 1e-5   # BatchNorm1d eps


def _graphnet_kernel(num_layers,
                     x_ref, edge_attr_ref, src_oh_ref, dst_oh_t_ref,
                     w1_ref, b1_ref, w2_ref, b2_ref,
                     out_ref):
    """All GENConv layers statically unrolled; everything VMEM-resident."""
    d = x_ref.shape[-1]

    x = x_ref[...]                       # [N, d] f32 node state (loop-carried value)
    edge_attr = edge_attr_ref[...]       # [M, d] f32
    src_oh = src_oh_ref[...]             # [M, N] bf16 one-hot gather operator
    dst_oh_t = dst_oh_t_ref[...]         # [N, M] bf16 transposed scatter operator

    for l in range(num_layers):          # static unroll: all layers in one invocation
        # ---- GENConv message: m_e = relu(x_src(e) + edge_attr_e) + eps -------
        x_j = jnp.dot(src_oh, x.astype(jnp.bfloat16),
                      preferred_element_type=jnp.float32)               # [M, d]
        msg = jnp.maximum(x_j + edge_attr, 0.0) + EPS                    # [M, d] f32

        # ---- softmax aggregation per destination node, per channel -----------
        # Global per-channel max (constant within every destination group =>
        # softmax unchanged, exp stays bounded).
        m = jnp.max(msg, axis=0, keepdims=True)                          # [1, d]
        e = jnp.exp(msg - m)                                             # [M, d]
        # Fused num/den scatter: single MXU op over the [M, 2d] concat.
        scat = jnp.dot(dst_oh_t,
                       jnp.concatenate([e * msg, e], axis=-1).astype(jnp.bfloat16),
                       preferred_element_type=jnp.float32)               # [N, 2d]
        num = scat[:, :d]
        den = scat[:, d:]
        # den == 0 (no incoming edges) => num == 0 exactly => aggr == 0.
        aggr = num * pl.reciprocal(jnp.maximum(den, 1e-30), approx=True)

        # ---- root add + MLP: Linear(d,2d){BN folded} -> ReLU -> Linear(2d,d) --
        h = aggr + x
        z = jnp.dot(h.astype(jnp.bfloat16), w1_ref[l],
                    preferred_element_type=jnp.float32) + b1_ref[l]      # [N, 2d]
        z = jnp.maximum(z, 0.0)
        x = jnp.dot(z.astype(jnp.bfloat16), w2_ref[l],
                    preferred_element_type=jnp.float32) + b2_ref[l]      # [N, d]

    out_ref[...] = x.astype(out_ref.dtype)                               # single write


def graphnet_forward(x, edge_index, edge_attr, params):
    """x: [N, d] f32, edge_index: [2, M] int32, edge_attr: [M, d] f32 -> [N, d]."""
    w1, b1, bn_gamma, bn_beta, bn_mean, bn_var, w2, b2 = params
    L = w1.shape[0]
    N, d = x.shape
    M = edge_attr.shape[0]
    hidden = w1.shape[-1]

    src, dst = edge_index[0], edge_index[1]
    node_ids = jnp.arange(N, dtype=jnp.int32)
    # One-hot gather / scatter operators (0/1 exact in bf16) so message passing
    # runs on the MXU at bf16 rate with half the f32 VMEM footprint.
    src_oh = (src[:, None] == node_ids[None, :]).astype(jnp.bfloat16)      # [M, N]
    dst_oh_t = (node_ids[:, None] == dst[None, :]).astype(jnp.bfloat16)    # [N, M]

    # Eval-mode BatchNorm folded into Linear1 (column scale + shifted bias).
    bn_scale = bn_gamma / jnp.sqrt(bn_var + BN_EPS)                        # [L, hidden]
    bn_shift = bn_beta - bn_mean * bn_scale
    w1f = (w1 * bn_scale[:, None, :]).astype(jnp.bfloat16)                 # [L, d, 2d]
    b1f = (b1 * bn_scale + bn_shift).reshape(L, 1, hidden).astype(jnp.float32)
    w2_bf = w2.astype(jnp.bfloat16)                                        # [L, 2d, d]
    b2_ = b2.reshape(L, 1, d).astype(jnp.float32)

    kernel = functools.partial(_graphnet_kernel, L)

    flops_per_layer = (2 * M * N * d            # gather matmul
                       + 2 * N * M * (2 * d)    # fused num/den scatter matmul
                       + 4 * N * d * hidden     # two MLP matmuls
                       + 10 * M * d + 8 * N * d)
    bytes_accessed = (x.size * 4 + edge_attr.size * 4
                      + src_oh.size * 2 + dst_oh_t.size * 2
                      + w1f.size * 2 + w2_bf.size * 2
                      + (b1f.size + b2_.size) * 4
                      + N * d * 4)
    cost = pl.CostEstimate(flops=int(L * flops_per_layer),
                           transcendentals=int(L * (M * d + N * d)),
                           bytes_accessed=int(bytes_accessed))

    vmem_spec = pl.BlockSpec(memory_space=pltpu.MemorySpace.VMEM)
    return pl.pallas_call(
        kernel,
        out_shape=jax.ShapeDtypeStruct((N, d), jnp.float32),
        in_specs=[vmem_spec] * 8,
        out_specs=vmem_spec,
        compiler_params=pltpu.CompilerParams(vmem_limit_bytes=32 * 1024 * 1024),
        cost_estimate=cost,
    )(x, edge_attr, src_oh, dst_oh_t, w1f, b1f, w2_bf, b2_)


def init_params(key, dim, num_layers=3, expansion=2):
    """GENConv defaults: MLP([d, 2d, d]) with BatchNorm1d(2d) + ReLU between layers."""
    hidden = dim * expansion
    keys = jax.random.split(key, num_layers * 6)

    def lin(kw, kb, fan_in, fan_out):
        bound = 1.0 / jnp.sqrt(fan_in)
        w = jax.random.uniform(kw, (fan_in, fan_out), jnp.float32, -bound, bound)
        b = jax.random.uniform(kb, (fan_out,), jnp.float32, -bound, bound)
        return w, b

    w1s, b1s, w2s, b2s, gs, bs = [], [], [], [], [], []
    for l in range(num_layers):
        k = keys[6 * l:6 * l + 6]
        w1, b1 = lin(k[0], k[1], dim, hidden)
        w2, b2 = lin(k[2], k[3], hidden, dim)
        # perturb BN affine params a little so the folded scale/shift path is exercised
        gs.append(jax.random.uniform(k[4], (hidden,), jnp.float32, 0.8, 1.2))
        bs.append(jax.random.uniform(k[5], (hidden,), jnp.float32, -0.1, 0.1))
        w1s.append(w1); b1s.append(b1); w2s.append(w2); b2s.append(b2)

    w1 = jnp.stack(w1s); b1 = jnp.stack(b1s)
    w2 = jnp.stack(w2s); b2 = jnp.stack(b2s)
    bn_gamma = jnp.stack(gs); bn_beta = jnp.stack(bs)
    bn_mean = jnp.zeros((num_layers, hidden), jnp.float32)   # running stats at init
    bn_var = jnp.ones((num_layers, hidden), jnp.float32)
    return (w1, b1, bn_gamma, bn_beta, bn_mean, bn_var, w2, b2)


def reference_forward(x, edge_index, edge_attr, params, mixed=False):
    """Plain-JAX GENConv x3 (softmax aggregation, eps=1e-7, MLP [d,2d,d] w/ eval BN).

    mixed=True mirrors the kernel's numerics: bf16 matmul inputs with f32
    accumulation and BatchNorm folded into Linear1 before the bf16 cast.
    """
    w1, b1, bn_gamma, bn_beta, bn_mean, bn_var, w2, b2 = params
    num_layers = w1.shape[0]
    N = x.shape[0]
    src, dst = edge_index[0], edge_index[1]

    def bf(a):  # bf16 round-trip (mirrors MXU input rounding)
        return a.astype(jnp.bfloat16).astype(jnp.float32)

    for l in range(num_layers):
        x_j = (bf(x) if mixed else x)[src]
        msg = jnp.maximum(x_j + edge_attr, 0.0) + EPS
        e = jnp.exp(msg - jnp.max(msg, axis=0, keepdims=True))
        num = jax.ops.segment_sum(bf(e * msg) if mixed else e * msg, dst, num_segments=N)
        den = jax.ops.segment_sum(bf(e) if mixed else e, dst, num_segments=N)
        aggr = jnp.where(den > 0, num / jnp.maximum(den, 1e-30), 0.0)
        h = aggr + x

        scale = bn_gamma[l] / jnp.sqrt(bn_var[l] + BN_EPS)
        shift = bn_beta[l] - bn_mean[l] * scale
        if mixed:
            w1_use = (w1[l] * scale[None, :]).astype(jnp.bfloat16)
            b1_use = b1[l] * scale + shift
            z = jnp.dot(h.astype(jnp.bfloat16), w1_use,
                        preferred_element_type=jnp.float32) + b1_use
            z = jnp.maximum(z, 0.0)
            x = jnp.dot(z.astype(jnp.bfloat16), w2[l].astype(jnp.bfloat16),
                        preferred_element_type=jnp.float32) + b2[l]
        else:
            z = jnp.dot(h, w1[l], precision=jax.lax.Precision.HIGHEST) + b1[l]
            z = z * scale + shift
            z = jnp.maximum(z, 0.0)
            x = jnp.dot(z, w2[l], precision=jax.lax.Precision.HIGHEST) + b2[l]
    return x


if __name__ == "__main__":
    key = jax.random.PRNGKey(0)
    k_param, k_x, k_edge, k_src, k_dst = jax.random.split(key, 5)

    # small shapes consistent with the module's forward
    N = 16           # nodes
    M = 48           # edges
    dim = 32         # node / edge feature dim (GENConv MLP hidden = 64)
    num_layers = 3

    params = init_params(k_param, dim, num_layers)
    x = 0.5 * jax.random.normal(k_x, (N, dim), jnp.float32)
    edge_attr = 0.5 * jax.random.normal(k_edge, (M, dim), jnp.float32)
    src = jax.random.randint(k_src, (M,), 0, N, jnp.int32)
    dst = jax.random.randint(k_dst, (M,), 0, N, jnp.int32)
    edge_index = jnp.stack([src, dst])

    out = graphnet_forward(x, edge_index, edge_attr, params)
    out = jax.block_until_ready(out)
    assert out.shape == (N, dim)

    # tight check: plain-JAX mirror of the kernel's numerics (bf16 MXU inputs,
    # f32 accumulation, folded BN); residual difference is the EUP approximate
    # reciprocal + f32 accumulation order.
    ref_mixed = reference_forward(x, edge_index, edge_attr, params, mixed=True)
    assert jnp.allclose(out, ref_mixed, atol=1e-2, rtol=1e-2), "mismatch vs bf16 mirror reference"

    # loose check: f32-faithful GENConv reference (difference is bf16 rounding
    # on the matmul inputs + approx reciprocal only)
    ref_f32 = reference_forward(x, edge_index, edge_attr, params, mixed=False)
    assert jnp.allclose(out, ref_f32, atol=5e-2, rtol=5e-2), "mismatch vs f32 reference"

    print("KERNEL_OK")
</pallas_src>

<mosaic_0001>
module attributes {stable_mosaic.version = 11 : i64} {
  func.func @_graphnet_kernel(%arg0: memref<16x32xf32, #tpu.memory_space<vmem>>, %arg1: memref<48x32xf32, #tpu.memory_space<vmem>>, %arg2: memref<48x16xbf16, #tpu.memory_space<vmem>>, %arg3: memref<16x48xbf16, #tpu.memory_space<vmem>>, %arg4: memref<3x32x64xbf16, #tpu.memory_space<vmem>>, %arg5: memref<3x1x64xf32, #tpu.memory_space<vmem>>, %arg6: memref<3x64x32xbf16, #tpu.memory_space<vmem>>, %arg7: memref<3x1x32xf32, #tpu.memory_space<vmem>>, %arg8: memref<16x32xf32, #tpu.memory_space<vmem>>) attributes {dimension_semantics = [], scalar_prefetch = 0 : i64, scratch_operands = 0 : i64, tpu.core_type = #tpu.core_type<tc>} {
    %c0 = arith.constant 0 : index
    %c0_0 = arith.constant 0 : index
    %0 = vector.load %arg0[%c0, %c0_0] : memref<16x32xf32, #tpu.memory_space<vmem>>, vector<16x32xf32>
    %c0_1 = arith.constant 0 : index
    %c0_2 = arith.constant 0 : index
    %1 = vector.load %arg1[%c0_1, %c0_2] : memref<48x32xf32, #tpu.memory_space<vmem>>, vector<48x32xf32>
    %c0_3 = arith.constant 0 : index
    %c0_4 = arith.constant 0 : index
    %2 = vector.load %arg2[%c0_3, %c0_4] : memref<48x16xbf16, #tpu.memory_space<vmem>>, vector<48x16xbf16>
    %c0_5 = arith.constant 0 : index
    %c0_6 = arith.constant 0 : index
    %3 = vector.load %arg3[%c0_5, %c0_6] : memref<16x48xbf16, #tpu.memory_space<vmem>>, vector<16x48xbf16>
    %4 = arith.truncf %0 : vector<16x32xf32> to vector<16x32xbf16>
    %cst = arith.constant dense<0.000000e+00> : vector<48x32xf32>
    %5 = tpu.matmul %2, %4, %cst {dimension_numbers = #tpu.dot_dimension_numbers<[1], [0], [0], [1], [0, 0, 1, 1], [], []>} : vector<48x16xbf16>, vector<16x32xbf16>, vector<48x32xf32> -> vector<48x32xf32>
    %6 = arith.addf %5, %1 : vector<48x32xf32>
    %cst_7 = arith.constant 0.000000e+00 : f32
    %7 = vector.broadcast %cst_7 : f32 to vector<48x32xf32>
    %8 = arith.maximumf %6, %7 : vector<48x32xf32>
    %cst_8 = arith.constant 1.000000e-07 : f32
    %9 = vector.broadcast %cst_8 : f32 to vector<48x32xf32>
    %10 = arith.addf %8, %9 : vector<48x32xf32>
    %cst_9 = arith.constant dense<0xFF800000> : vector<32xf32>
    %11 = vector.multi_reduction <maximumf>, %10, %cst_9 [0] : vector<48x32xf32> to vector<32xf32>
    %12 = vector.shape_cast %11 : vector<32xf32> to vector<1x32xf32>
    %13 = vector.broadcast %12 : vector<1x32xf32> to vector<48x32xf32>
    %14 = arith.subf %10, %13 : vector<48x32xf32>
    %15 = math.exp %14 : vector<48x32xf32>
    %16 = arith.mulf %15, %10 : vector<48x32xf32>
    %17 = tpu.concatenate %16, %15 in 1 : vector<48x32xf32>, vector<48x32xf32> -> vector<48x64xf32>
    %18 = arith.truncf %17 : vector<48x64xf32> to vector<48x64xbf16>
    %cst_10 = arith.constant dense<0.000000e+00> : vector<16x64xf32>
    %19 = tpu.matmul %3, %18, %cst_10 {dimension_numbers = #tpu.dot_dimension_numbers<[1], [0], [0], [1], [0, 0, 1, 1], [], []>} : vector<16x48xbf16>, vector<48x64xbf16>, vector<16x64xf32> -> vector<16x64xf32>
    %20 = vector.extract_strided_slice %19 {offsets = [0, 0], sizes = [16, 32], strides = [1, 1]} : vector<16x64xf32> to vector<16x32xf32>
    %21 = vector.extract_strided_slice %19 {offsets = [0, 32], sizes = [16, 32], strides = [1, 1]} : vector<16x64xf32> to vector<16x32xf32>
    %cst_11 = arith.constant 1.000000e-30 : f32
    %22 = vector.broadcast %cst_11 : f32 to vector<16x32xf32>
    %23 = arith.maximumf %21, %22 : vector<16x32xf32>
    %24 = tpu.reciprocal %23 {approx = true} : vector<16x32xf32> -> vector<16x32xf32>
    %25 = arith.mulf %20, %24 : vector<16x32xf32>
    %26 = arith.addf %25, %0 : vector<16x32xf32>
    %27 = arith.truncf %26 : vector<16x32xf32> to vector<16x32xbf16>
    %c0_12 = arith.constant 0 : index
    %c0_13 = arith.constant 0 : index
    %c0_14 = arith.constant 0 : index
    %28 = vector.load %arg4[%c0_12, %c0_13, %c0_14] : memref<3x32x64xbf16, #tpu.memory_space<vmem>>, vector<1x32x64xbf16>
    %29 = vector.shape_cast %28 : vector<1x32x64xbf16> to vector<32x64xbf16>
    %cst_15 = arith.constant dense<0.000000e+00> : vector<16x64xf32>
    %30 = tpu.matmul %27, %29, %cst_15 {dimension_numbers = #tpu.dot_dimension_numbers<[1], [0], [0], [1], [0, 0, 1, 1], [], []>} : vector<16x32xbf16>, vector<32x64xbf16>, vector<16x64xf32> -> vector<16x64xf32>
    %c0_16 = arith.constant 0 : index
    %c0_17 = arith.constant 0 : index
    %c0_18 = arith.constant 0 : index
    %31 = vector.load %arg5[%c0_16, %c0_17, %c0_18] : memref<3x1x64xf32, #tpu.memory_space<vmem>>, vector<1x1x64xf32>
    %32 = vector.shape_cast %31 : vector<1x1x64xf32> to vector<1x64xf32>
    %33 = vector.broadcast %32 : vector<1x64xf32> to vector<16x64xf32>
    %34 = arith.addf %30, %33 : vector<16x64xf32>
    %cst_19 = arith.constant 0.000000e+00 : f32
    %35 = vector.broadcast %cst_19 : f32 to vector<16x64xf32>
    %36 = arith.maximumf %34, %35 : vector<16x64xf32>
    %37 = arith.truncf %36 : vector<16x64xf32> to vector<16x64xbf16>
    %c0_20 = arith.constant 0 : index
    %c0_21 = arith.constant 0 : index
    %c0_22 = arith.constant 0 : index
    %38 = vector.load %arg6[%c0_20, %c0_21, %c0_22] : memref<3x64x32xbf16, #tpu.memory_space<vmem>>, vector<1x64x32xbf16>
    %39 = vector.shape_cast %38 : vector<1x64x32xbf16> to vector<64x32xbf16>
    %cst_23 = arith.constant dense<0.000000e+00> : vector<16x32xf32>
    %40 = tpu.matmul %37, %39, %cst_23 {dimension_numbers = #tpu.dot_dimension_numbers<[1], [0], [0], [1], [0, 0, 1, 1], [], []>} : vector<16x64xbf16>, vector<64x32xbf16>, vector<16x32xf32> -> vector<16x32xf32>
    %c0_24 = arith.constant 0 : index
    %c0_25 = arith.constant 0 : index
    %c0_26 = arith.constant 0 : index
    %41 = vector.load %arg7[%c0_24, %c0_25, %c0_26] : memref<3x1x32xf32, #tpu.memory_space<vmem>>, vector<1x1x32xf32>
    %42 = vector.shape_cast %41 : vector<1x1x32xf32> to vector<1x32xf32>
    %43 = vector.broadcast %42 : vector<1x32xf32> to vector<16x32xf32>
    %44 = arith.addf %40, %43 : vector<16x32xf32>
    %45 = arith.truncf %44 : vector<16x32xf32> to vector<16x32xbf16>
    %cst_27 = arith.constant dense<0.000000e+00> : vector<48x32xf32>
    %46 = tpu.matmul %2, %45, %cst_27 {dimension_numbers = #tpu.dot_dimension_numbers<[1], [0], [0], [1], [0, 0, 1, 1], [], []>} : vector<48x16xbf16>, vector<16x32xbf16>, vector<48x32xf32> -> vector<48x32xf32>
    %47 = arith.addf %46, %1 : vector<48x32xf32>
    %cst_28 = arith.constant 0.000000e+00 : f32
    %48 = vector.broadcast %cst_28 : f32 to vector<48x32xf32>
    %49 = arith.maximumf %47, %48 : vector<48x32xf32>
    %cst_29 = arith.constant 1.000000e-07 : f32
    %50 = vector.broadcast %cst_29 : f32 to vector<48x32xf32>
    %51 = arith.addf %49, %50 : vector<48x32xf32>
    %cst_30 = arith.constant dense<0xFF800000> : vector<32xf32>
    %52 = vector.multi_reduction <maximumf>, %51, %cst_30 [0] : vector<48x32xf32> to vector<32xf32>
    %53 = vector.shape_cast %52 : vector<32xf32> to vector<1x32xf32>
    %54 = vector.broadcast %53 : vector<1x32xf32> to vector<48x32xf32>
    %55 = arith.subf %51, %54 : vector<48x32xf32>
    %56 = math.exp %55 : vector<48x32xf32>
    %57 = arith.mulf %56, %51 : vector<48x32xf32>
    %58 = tpu.concatenate %57, %56 in 1 : vector<48x32xf32>, vector<48x32xf32> -> vector<48x64xf32>
    %59 = arith.truncf %58 : vector<48x64xf32> to vector<48x64xbf16>
    %cst_31 = arith.constant dense<0.000000e+00> : vector<16x64xf32>
    %60 = tpu.matmul %3, %59, %cst_31 {dimension_numbers = #tpu.dot_dimension_numbers<[1], [0], [0], [1], [0, 0, 1, 1], [], []>} : vector<16x48xbf16>, vector<48x64xbf16>, vector<16x64xf32> -> vector<16x64xf32>
    %61 = vector.extract_strided_slice %60 {offsets = [0, 0], sizes = [16, 32], strides = [1, 1]} : vector<16x64xf32> to vector<16x32xf32>
    %62 = vector.extract_strided_slice %60 {offsets = [0, 32], sizes = [16, 32], strides = [1, 1]} : vector<16x64xf32> to vector<16x32xf32>
    %cst_32 = arith.constant 1.000000e-30 : f32
    %63 = vector.broadcast %cst_32 : f32 to vector<16x32xf32>
    %64 = arith.maximumf %62, %63 : vector<16x32xf32>
    %65 = tpu.reciprocal %64 {approx = true} : vector<16x32xf32> -> vector<16x32xf32>
    %66 = arith.mulf %61, %65 : vector<16x32xf32>
    %67 = arith.addf %66, %44 : vector<16x32xf32>
    %68 = arith.truncf %67 : vector<16x32xf32> to vector<16x32xbf16>
    %c1 = arith.constant 1 : index
    %c0_33 = arith.constant 0 : index
    %c0_34 = arith.constant 0 : index
    %69 = vector.load %arg4[%c1, %c0_33, %c0_34] : memref<3x32x64xbf16, #tpu.memory_space<vmem>>, vector<1x32x64xbf16>
    %70 = vector.shape_cast %69 : vector<1x32x64xbf16> to vector<32x64xbf16>
    %cst_35 = arith.constant dense<0.000000e+00> : vector<16x64xf32>
    %71 = tpu.matmul %68, %70, %cst_35 {dimension_numbers = #tpu.dot_dimension_numbers<[1], [0], [0], [1], [0, 0, 1, 1], [], []>} : vector<16x32xbf16>, vector<32x64xbf16>, vector<16x64xf32> -> vector<16x64xf32>
    %c1_36 = arith.constant 1 : index
    %c0_37 = arith.constant 0 : index
    %c0_38 = arith.constant 0 : index
    %72 = vector.load %arg5[%c1_36, %c0_37, %c0_38] : memref<3x1x64xf32, #tpu.memory_space<vmem>>, vector<1x1x64xf32>
    %73 = vector.shape_cast %72 : vector<1x1x64xf32> to vector<1x64xf32>
    %74 = vector.broadcast %73 : vector<1x64xf32> to vector<16x64xf32>
    %75 = arith.addf %71, %74 : vector<16x64xf32>
    %cst_39 = arith.constant 0.000000e+00 : f32
    %76 = vector.broadcast %cst_39 : f32 to vector<16x64xf32>
    %77 = arith.maximumf %75, %76 : vector<16x64xf32>
    %78 = arith.truncf %77 : vector<16x64xf32> to vector<16x64xbf16>
    %c1_40 = arith.constant 1 : index
    %c0_41 = arith.constant 0 : index
    %c0_42 = arith.constant 0 : index
    %79 = vector.load %arg6[%c1_40, %c0_41, %c0_42] : memref<3x64x32xbf16, #tpu.memory_space<vmem>>, vector<1x64x32xbf16>
    %80 = vector.shape_cast %79 : vector<1x64x32xbf16> to vector<64x32xbf16>
    %cst_43 = arith.constant dense<0.000000e+00> : vector<16x32xf32>
    %81 = tpu.matmul %78, %80, %cst_43 {dimension_numbers = #tpu.dot_dimension_numbers<[1], [0], [0], [1], [0, 0, 1, 1], [], []>} : vector<16x64xbf16>, vector<64x32xbf16>, vector<16x32xf32> -> vector<16x32xf32>
    %c1_44 = arith.constant 1 : index
    %c0_45 = arith.constant 0 : index
    %c0_46 = arith.constant 0 : index
    %82 = vector.load %arg7[%c1_44, %c0_45, %c0_46] : memref<3x1x32xf32, #tpu.memory_space<vmem>>, vector<1x1x32xf32>
    %83 = vector.shape_cast %82 : vector<1x1x32xf32> to vector<1x32xf32>
    %84 = vector.broadcast %83 : vector<1x32xf32> to vector<16x32xf32>
    %85 = arith.addf %81, %84 : vector<16x32xf32>
    %86 = arith.truncf %85 : vector<16x32xf32> to vector<16x32xbf16>
    %cst_47 = arith.constant dense<0.000000e+00> : vector<48x32xf32>
    %87 = tpu.matmul %2, %86, %cst_47 {dimension_numbers = #tpu.dot_dimension_numbers<[1], [0], [0], [1], [0, 0, 1, 1], [], []>} : vector<48x16xbf16>, vector<16x32xbf16>, vector<48x32xf32> -> vector<48x32xf32>
    %88 = arith.addf %87, %1 : vector<48x32xf32>
    %cst_48 = arith.constant 0.000000e+00 : f32
    %89 = vector.broadcast %cst_48 : f32 to vector<48x32xf32>
    %90 = arith.maximumf %88, %89 : vector<48x32xf32>
    %cst_49 = arith.constant 1.000000e-07 : f32
    %91 = vector.broadcast %cst_49 : f32 to vector<48x32xf32>
    %92 = arith.addf %90, %91 : vector<48x32xf32>
    %cst_50 = arith.constant dense<0xFF800000> : vector<32xf32>
    %93 = vector.multi_reduction <maximumf>, %92, %cst_50 [0] : vector<48x32xf32> to vector<32xf32>
    %94 = vector.shape_cast %93 : vector<32xf32> to vector<1x32xf32>
    %95 = vector.broadcast %94 : vector<1x32xf32> to vector<48x32xf32>
    %96 = arith.subf %92, %95 : vector<48x32xf32>
    %97 = math.exp %96 : vector<48x32xf32>
    %98 = arith.mulf %97, %92 : vector<48x32xf32>
    %99 = tpu.concatenate %98, %97 in 1 : vector<48x32xf32>, vector<48x32xf32> -> vector<48x64xf32>
    %100 = arith.truncf %99 : vector<48x64xf32> to vector<48x64xbf16>
    %cst_51 = arith.constant dense<0.000000e+00> : vector<16x64xf32>
    %101 = tpu.matmul %3, %100, %cst_51 {dimension_numbers = #tpu.dot_dimension_numbers<[1], [0], [0], [1], [0, 0, 1, 1], [], []>} : vector<16x48xbf16>, vector<48x64xbf16>, vector<16x64xf32> -> vector<16x64xf32>
    %102 = vector.extract_strided_slice %101 {offsets = [0, 0], sizes = [16, 32], strides = [1, 1]} : vector<16x64xf32> to vector<16x32xf32>
    %103 = vector.extract_strided_slice %101 {offsets = [0, 32], sizes = [16, 32], strides = [1, 1]} : vector<16x64xf32> to vector<16x32xf32>
    %cst_52 = arith.constant 1.000000e-30 : f32
    %104 = vector.broadcast %cst_52 : f32 to vector<16x32xf32>
    %105 = arith.maximumf %103, %104 : vector<16x32xf32>
    %106 = tpu.reciprocal %105 {approx = true} : vector<16x32xf32> -> vector<16x32xf32>
    %107 = arith.mulf %102, %106 : vector<16x32xf32>
    %108 = arith.addf %107, %85 : vector<16x32xf32>
    %109 = arith.truncf %108 : vector<16x32xf32> to vector<16x32xbf16>
    %c2 = arith.constant 2 : index
    %c0_53 = arith.constant 0 : index
    %c0_54 = arith.constant 0 : index
    %110 = vector.load %arg4[%c2, %c0_53, %c0_54] : memref<3x32x64xbf16, #tpu.memory_space<vmem>>, vector<1x32x64xbf16>
    %111 = vector.shape_cast %110 : vector<1x32x64xbf16> to vector<32x64xbf16>
    %cst_55 = arith.constant dense<0.000000e+00> : vector<16x64xf32>
    %112 = tpu.matmul %109, %111, %cst_55 {dimension_numbers = #tpu.dot_dimension_numbers<[1], [0], [0], [1], [0, 0, 1, 1], [], []>} : vector<16x32xbf16>, vector<32x64xbf16>, vector<16x64xf32> -> vector<16x64xf32>
    %c2_56 = arith.constant 2 : index
    %c0_57 = arith.constant 0 : index
    %c0_58 = arith.constant 0 : index
    %113 = vector.load %arg5[%c2_56, %c0_57, %c0_58] : memref<3x1x64xf32, #tpu.memory_space<vmem>>, vector<1x1x64xf32>
    %114 = vector.shape_cast %113 : vector<1x1x64xf32> to vector<1x64xf32>
    %115 = vector.broadcast %114 : vector<1x64xf32> to vector<16x64xf32>
    %116 = arith.addf %112, %115 : vector<16x64xf32>
    %cst_59 = arith.constant 0.000000e+00 : f32
    %117 = vector.broadcast %cst_59 : f32 to vector<16x64xf32>
    %118 = arith.maximumf %116, %117 : vector<16x64xf32>
    %119 = arith.truncf %118 : vector<16x64xf32> to vector<16x64xbf16>
    %c2_60 = arith.constant 2 : index
    %c0_61 = arith.constant 0 : index
    %c0_62 = arith.constant 0 : index
    %120 = vector.load %arg6[%c2_60, %c0_61, %c0_62] : memref<3x64x32xbf16, #tpu.memory_space<vmem>>, vector<1x64x32xbf16>
    %121 = vector.shape_cast %120 : vector<1x64x32xbf16> to vector<64x32xbf16>
    %cst_63 = arith.constant dense<0.000000e+00> : vector<16x32xf32>
    %122 = tpu.matmul %119, %121, %cst_63 {dimension_numbers = #tpu.dot_dimension_numbers<[1], [0], [0], [1], [0, 0, 1, 1], [], []>} : vector<16x64xbf16>, vector<64x32xbf16>, vector<16x32xf32> -> vector<16x32xf32>
    %c2_64 = arith.constant 2 : index
    %c0_65 = arith.constant 0 : index
    %c0_66 = arith.constant 0 : index
    %123 = vector.load %arg7[%c2_64, %c0_65, %c0_66] : memref<3x1x32xf32, #tpu.memory_space<vmem>>, vector<1x1x32xf32>
    %124 = vector.shape_cast %123 : vector<1x1x32xf32> to vector<1x32xf32>
    %125 = vector.broadcast %124 : vector<1x32xf32> to vector<16x32xf32>
    %126 = arith.addf %122, %125 : vector<16x32xf32>
    %c0_67 = arith.constant 0 : index
    %c0_68 = arith.constant 0 : index
    %127 = vector.load %arg8[%c0_67, %c0_68] : memref<16x32xf32, #tpu.memory_space<vmem>>, vector<16x32xf32>
    tpu.vector_store %arg8[%c0_67, %c0_68], %126 {strides = array<i32>} : memref<16x32xf32, #tpu.memory_space<vmem>>, vector<16x32xf32>,
    return
  }
}

</mosaic_0001>

<bundles_post_ra>
// kernel: tpu_custom_call.1
= control target key start
LH: loop header
LB: loop body
LE: loop exit
PB: predicated region body
PF: predicated region fallthrough
CT: control target
= control target key end

     0   :  { %v1576_v2 = vmov 0.0   ;;  %vm1577_vm0 = vmmov 0   ;;  %vm63_vm1 = vcmask 130048   ;;  %s1960_s0 = inlined_call_operand.vmem [shape: f32[16,32], index: 0, kind: input, shape index: {}]   ;;  %s1961_s1 = inlined_call_operand.vmem [shape: f32[48,32], index: 1, kind: input, shape index: {}]   ;;  %s1962_s2 = inlined_call_operand.vmem [shape: bf16[48,16], index: 2, kind: input, shape index: {}]   ;;  %s1963_s3 = inlined_call_operand.vmem [shape: bf16[16,48], index: 3, kind: input, shape index: {}]   ;;  %s1964_s4 = inlined_call_operand.vmem [shape: bf16[3,32,64], index: 4, kind: input, shape index: {}]   ;;  %s1965_s5 = inlined_call_operand.vmem [shape: f32[3,1,64], index: 5, kind: input, shape index: {}]   ;;  %s1966_s6 = inlined_call_operand.vmem [shape: bf16[3,64,32], index: 6, kind: input, shape index: {}]   ;;  %s1967_s7 = inlined_call_operand.vmem [shape: f32[3,1,32], index: 7, kind: input, shape index: {}]   ;;  %s1968_s8 = inlined_call_operand.hbm [shape: f32[16,32], index: 8, kind: output, shape index: {}]  }
   0x1   :  { %v1631_v0 = vld [vmem:[%s1960_s0] sm:$0xff]  ;;  %v1636_v1 = vld [vmem:[%s1960_s0 + $0x8] sm:$0xff]  ;;  %1296 = vmatprep.subr.bf16.mxu0 %v1576_v2  ;;  %1428 = vmatprep.subr.bf16.mxu1 %v1576_v2  ;;  %v1654_v5 = vld [vmem:[%s1962_s2 + $0x10] sm:$0xff]  }
   0x2   :  { %v47_v3 = vpack.c.bf16 %v1636_v1, %v1631_v0  ;;  %v1645_v4 = vld [vmem:[%s1962_s2] sm:$0xff]   ;;  %1298 = vmatprep.mubr.msk.bf16.mxu0 %vm1577_vm0, %v1576_v2  ;;  %1306 = vmatprep.mubr.msk.bf16.mxu1 %vm1577_vm0, %v1576_v2  ;;  %v1669_v6 = vld [vmem:[%s1962_s2 + $0x8] sm:$0xff]  }
   0x4   :  { %1297 = vmatpush3.bf16.msra.mxu0 %v47_v3  ;;  %1429 = vmatpush3.bf16.msra.mxu1 %v47_v3 }
   0x5   :  { %1310 = vmatprep.subr.bf16.mxu1 %v1576_v2  ;;  %1328 = vmatprep.subr.bf16.mxu0 %v1576_v2 }
   0x7   :  { %1299 = vmatmul.mubr.msk.bf16.vlgmr.msra.gmra.mrb[0].mxu0 %vm63_vm1, %v1645_v4  ;;  %1307 = vmatmul.mubr.msk.bf16.vlgmr.msra.gmra.mrb[0].mxu1 %vm63_vm1, %v1654_v5 }
   0x8   :  { %1302 = vmatprep.mubr.msk.bf16.mxu0 %vm1577_vm0, %v1576_v2  ;;  %1316 = vmatprep.mubr.msk.bf16.mxu1 %vm1577_vm0, %v1576_v2 }
   0xf   :  { %1303 = vmatmul.mubr.msk.bf16.gmra.mrb[4].mxu0 %vm63_vm1, %v1669_v6 }
  0x10   :  { %1336 = vmatprep.mubr.msk.bf16.mxu0 %vm1577_vm0, %v1576_v2 }
  0x11   :  { %13 = vsyncpa [#allocation3], 0  ;;  %v1678_v7 = vld [vmem:[%s1961_s1] sm:$0xff]  ;;  %v1688_v11 = vld [vmem:[%s1961_s1 + $0x8] sm:$0xff]  ;;  %vm142_vm2 = vcmask 261120   ;;  %vm222_vm3 = vcmask 392192  }
  0x12   :  { %v1683_v8 = vld [vmem:[%s1961_s1 + $0x20] sm:$0xff]  ;;  %v1693_v12 = vld [vmem:[%s1961_s1 + $0x28] sm:$0xff]  ;;  %v1702_v29 = vld [vmem:[%s1961_s1 + $0x10] sm:$0xff]  ;;  %s1579_s11 = smov 96   ;;  %vm393_vm4 = vcmask 523264  }
  0x13   :  { %v1709_v36 = vld [vmem:[%s1961_s1 + $0x18] sm:$0xff]  ;;  %s1578_s1 = smov 32  }
  0xda   :  { %v107_v9 = vpop.f32.mrb[0].mxu0  ;;  %v123_v10 = vpop.f32.mrb[0].mxu1 }
  0xdb   :  { %v108_v13 = vadd.f32 %v107_v9, %v1678_v7  ;;  %v124_v14 = vadd.f32 %v123_v10, %v1683_v8  ;;  %v1300_v15 = vpop.f32.mrb[1].mxu0  ;;  %v1308_v16 = vpop.f32.mrb[1].mxu1 }
  0xdc   :  { %v110_v17 = vpop.f32.mrb[2].mxu0  ;;  %v126_v18 = vpop.f32.mrb[2].mxu1 }
  0xdd   :  { %v130_v19 = vmax.f32 %v108_v13, 0.0  ;;  %v134_v20 = vmax.f32 %v124_v14, 0.0  ;;  %v111_v21 = vadd.f32 %v110_v17, %v1688_v11  ;;  %v127_v22 = vadd.f32 %v126_v18, %v1693_v12  ;;  %v1301_v23 = vpop.f32.mrb[3].mxu0  ;;  %v1309_v24 = vpop.f32.mrb[3].mxu1 }
  0xdf   :  { %v136_v25 = vadd.f32 1e-07, %v130_v19  ;;  %v140_v26 = vadd.f32 1e-07, %v134_v20  ;;  %v131_v27 = vmax.f32 %v111_v21, 0.0  ;;  %v135_v28 = vmax.f32 %v127_v22, 0.0 }
  0xe1   :  { %v143_v30 = vsel %vm142_vm2, %v136_v25, -inf  ;;  %v147_v31 = vsel %vm142_vm2, %v140_v26, -inf  ;;  %v137_v32 = vadd.f32 1e-07, %v131_v27  ;;  %v141_v33 = vadd.f32 1e-07, %v135_v28 }
  0xe2   :  { %v148_v34 = vmax.f32 %v143_v30, %v147_v31  ;;  %v115_v35 = vpop.f32.mrb[4].mxu0 }
  0xe3   :  { %v144_v37 = vsel %vm142_vm2, %v137_v32, -inf  ;;  %v149_v38 = vsel %vm142_vm2, %v141_v33, -inf  ;;  %v116_v39 = vadd.f32 %v115_v35, %v1702_v29  ;;  %v1304_v40 = vpop.f32.mrb[5].mxu0 }
  0xe4   :  { %v150_v41 = vmax.f32 %v144_v37, %v149_v38  ;;  %v118_v42 = vpop.f32.mrb[6].mxu0 }
  0xe5   :  { %v132_v43 = vmax.f32 %v116_v39, 0.0  ;;  %v119_v44 = vadd.f32 %v118_v42, %v1709_v36  ;;  %v1305_v45 = vpop.f32.mrb[7].mxu0 }
  0xe6   :  { %v151_v46 = vmax.f32 %v148_v34, %v150_v41 }
  0xe7   :  { %v138_v47 = vadd.f32 1e-07, %v132_v43  ;;  %v133_v48 = vmax.f32 %v119_v44, 0.0 }
  0xe9   :  { %v139_v49 = vadd.f32 1e-07, %v133_v48  ;;  %v145_v50 = vsel %vm142_vm2, %v138_v47, -inf }
  0xeb   :  { %v146_v51 = vsel %vm142_vm2, %v139_v49, -inf }
  0xec   :  { %v152_v52 = vmax.f32 %v145_v50, %v146_v51 }
  0xee   :  { %v153_v53 = vmax.f32 %v151_v46, %v152_v52 }
  0xf0   :  { %v154_v54 = vrot.slane %v153_v53, 4 }
  0xf2   :  { %v155_v55 = vmax.f32 %v153_v53, %v154_v54  ;;  %v1731_v53 = vld [vmem:[%s1963_s3] sm:$0xff]  }
  0xf4   :  { %v156_v56 = vrot.slane %v155_v55, 2 }
  0xf6   :  { %v157_v57 = vmax.f32 %v155_v55, %v156_v56 }
  0xf8   :  { %v158_v58 = vrot.slane %v157_v57, 1 }
  0xfa   :  { %v159_v59 = vmax.f32 %v157_v57, %v158_v58  ;;  %v1486_v57 = vld [vmem:[%s1964_s4] sm:$0xff]  }
  0xfc   :  { %v163_v60 = vsub.f32 %v139_v49, %v159_v59  ;;  %v164_v61 = vsub.f32 %v140_v26, %v159_v59  ;;  %v165_v62 = vsub.f32 %v141_v33, %v159_v59  ;;  %v160_v63 = vsub.f32 %v136_v25, %v159_v59 }
  0xfd   :  { %v161_v3 = vsub.f32 %v137_v32, %v159_v59  ;;  %v162_v9 = vsub.f32 %v138_v47, %v159_v59 }
  0xfe   :  { %v172_v10 = vmul.f32 1.442695, %v163_v60  ;;  %v174_v13 = vmul.f32 1.442695, %v164_v61  ;;  %v176_v14 = vmul.f32 1.442695, %v165_v62 }
  0xff   :  { %v166_v15 = vmul.f32 1.442695, %v160_v63  ;;  %v168_v16 = vmul.f32 1.442695, %v161_v3  ;;  %v170_v17 = vmul.f32 1.442695, %v162_v9 }
 0x100   :  { %1504 = vpow2.f32 %v172_v10  ;;  %v1487_v61 = vld [vmem:[%s1964_s4 + $0x8] sm:$0xff]   ;;  %v1488_v62 = vld [vmem:[%s1966_s6] sm:$0xff]  }
 0x101   :  { %1506 = vpow2.f32 %v174_v13  ;;  %1329 = vmatpush3.bf16.msra.mxu0 %v1488_v62  ;;  %v1489_v63 = vld [vmem:[%s1966_s6 + $0x8] sm:$0xff]  }
 0x102   :  { %1508 = vpow2.f32 %v176_v14  ;;  %1330 = vmatprep.subr.bf16.mxu0 %v1576_v2 }
 0x103   :  { %1510 = vpow2.f32 %v166_v15 }
 0x104   :  { %1512 = vpow2.f32 %v168_v16 }
 0x105   :  { %1514 = vpow2.f32 %v170_v17  ;;  %1331 = vmatpush3.bf16.msra.mxu0 %v1489_v63 }
 0x106   :  { %1332 = vmatprep.subr.bf16.mxu0 %v1576_v2 }
 0x10a   :  { %v1505_v18 = vpop.eup %1504 }
 0x10b   :  { %v1507_v19 = vpop.eup %1506  ;;  %v181_v20 = vmul.f32 %v1505_v18, %v139_v49 }
 0x10c   :  { %v1509_v21 = vpop.eup %1508  ;;  %v182_v22 = vmul.f32 %v1507_v19, %v140_v26 }
 0x10d   :  { %v1511_v23 = vpop.eup %1510  ;;  %v1447_v24 = vpack.i.bf16 %v1509_v21, %v1507_v19  ;;  %v183_v27 = vmul.f32 %v1509_v21, %v141_v33  ;;  %v1490_v19 = vld [vmem:[%s1966_s6 + $0x10] sm:$0xff]  }
 0x10e   :  { %v1513_v28 = vpop.eup %1512  ;;  %v178_v30 = vmul.f32 %v1511_v23, %v136_v25  ;;  %1333 = vmatpush3.bf16.msra.mxu0 %v1490_v19 }
 0x10f   :  { %v1515_v31 = vpop.eup %1514  ;;  %1448 = vrot.lane.b32.xlu1 %v1447_v24, %s1578_s1  ;;  %v1437_v34 = vpack.i.bf16 %v1513_v28, %v1511_v23  ;;  %v179_v35 = vmul.f32 %v1513_v28, %v137_v32  ;;  %1334 = vmatprep.subr.bf16.mxu0 %v1576_v2 }
 0x110   :  { %v1442_v37 = vpack.i.bf16 %v1505_v18, %v1515_v31  ;;  %v180_v38 = vmul.f32 %v1515_v31, %v138_v47 }
 0x111   :  { %1438 = vrot.lane.b32.xlu0 %v1437_v34, %s1578_s1  ;;  %v1186_v34 = vld [vmem:[%s1967_s7] ss:$0 sm:$0xff] }
 0x115   :  { %1443 = vrot.lane.b32.xlu0 %v1442_v37, %s1578_s1 }
 0x181   :  { %v1449_v39 = vpop.permute.xlu1 %1448 }
 0x182   :  { %v1451_v40 = vunpack.i.h.bf16 %v1449_v39  ;;  %v1450_v26 = vunpack.i.l.bf16 %v1449_v39 }
 0x183   :  { %v1439_v41 = vpop.permute.xlu0 %1438 }
 0x184   :  { %v213_v33 = vsel %vm142_vm2, %v183_v27, %v1451_v40  ;;  %v212_v25 = vsel %vm142_vm2, %v182_v22, %v1450_v26  ;;  %v1441_v42 = vunpack.i.h.bf16 %v1439_v41  ;;  %v1440_v43 = vunpack.i.l.bf16 %v1439_v41 }
 0x185   :  { %v216_v44 = vpack.c.bf16 %v213_v33, %v212_v25 }
 0x186   :  { %v209_v45 = vsel %vm142_vm2, %v179_v35, %v1441_v42  ;;  %v208_v32 = vsel %vm142_vm2, %v178_v30, %v1440_v43 }
 0x187   :  { %v214_v46 = vpack.c.bf16 %v209_v45, %v208_v32  ;;  %v1444_v47 = vpop.permute.xlu0 %1443 }
 0x188   :  { %v1446_v48 = vunpack.i.h.bf16 %v1444_v47  ;;  %v1445_v49 = vunpack.i.l.bf16 %v1444_v47 }
 0x189   :  { %1311 = vmatpush3.bf16.msra.mxu1 %v214_v46 }
 0x18a   :  { %v211_v50 = vsel %vm142_vm2, %v181_v20, %v1446_v48  ;;  %v210_v51 = vsel %vm142_vm2, %v180_v38, %v1445_v49  ;;  %1312 = vmatprep.subr.bf16.mxu1 %v1576_v2  ;;  %v1491_v20 = vld [vmem:[%s1966_s6 + $0x18] sm:$0xff]  }
 0x18b   :  { %v215_v52 = vpack.c.bf16 %v211_v50, %v210_v51  ;;  %1335 = vmatpush3.bf16.msra.mxu0 %v1491_v20 }
 0x18c   :  { %1354 = vmatprep.subr.bf16.mxu0 %v1576_v2 }
 0x18d   :  { %1313 = vmatpush3.bf16.msra.mxu1 %v215_v52 }
 0x18e   :  { %1314 = vmatprep.subr.bf16.mxu1 %v1576_v2 }
 0x191   :  { %1315 = vmatpush3.bf16.msra.mxu1 %v216_v44 }
 0x192   :  { %1320 = vmatprep.subr.bf16.mxu1 %v1576_v2 }
 0x194   :  { %1317 = vmatmul.mubr.msk.bf16.vlgmr.msra.gmra.mrb[4].mxu1 %vm222_vm3, %v1731_v53 }
 0x195   :  { %1324 = vmatprep.mubr.msk.bf16.mxu1 %vm1577_vm0, %v1576_v2  ;;  %1321 = vmatpush3.bf16.msra.mxu1 %v1486_v57 }
 0x196   :  { %1322 = vmatprep.subr.bf16.mxu1 %v1576_v2 }
 0x199   :  { %1323 = vmatpush3.bf16.msra.mxu1 %v1487_v61 }
 0x19a   :  { %1340 = vmatprep.subr.bf16.mxu1 %v1576_v2 }
 0x267   :  { %v260_v54 = vpop.f32.mrb[4].mxu1 }
 0x268   :  { %v267_v55 = vmax.f32 %v260_v54, 1e-30  ;;  %v1318_v56 = vpop.f32.mrb[5].mxu1 }
 0x269   :  { %v263_v58 = vpop.f32.mrb[6].mxu1 }
 0x26a   :  { %1516 = vrcp.f32 %v267_v55  ;;  %v268_v59 = vmax.f32 %v263_v58, 1e-30  ;;  %v1319_v60 = vpop.f32.mrb[7].mxu1 }
 0x26c   :  { %1518 = vrcp.f32 %v268_v59 }
 0x274   :  { %v1517_v3 = vpop.eup %1516 }
 0x275   :  { %273 = vrot.lane.b32.xlu1 %v1517_v3, %s1579_s11 }
 0x276   :  { %v1519_v9 = vpop.eup %1518 }
 0x277   :  { %275 = vrot.lane.b32.xlu0 %v1519_v9, %s1579_s11 }
 0x2e7   :  { %v274_v10 = vpop.permute.xlu1 %273 }
 0x2e8   :  { %v279_v13 = vmul.f32 %v274_v10, %v260_v54 }
 0x2e9   :  { %v276_v14 = vpop.permute.xlu0 %275 }
 0x2ea   :  { %v280_v15 = vmul.f32 %v276_v14, %v263_v58  ;;  %v281_v16 = vadd.f32 %v279_v13, %v1631_v0  ;;  %v1182_v0 = vld [vmem:[%s1965_s5] ss:$0 sm:$0xff] }
 0x2ec   :  { %v282_v17 = vadd.f32 %v280_v15, %v1636_v1 }
 0x2ee   :  { %v283_v18 = vpack.c.bf16 %v282_v17, %v281_v16 }
 0x2f0   :  { %1325 = vmatmul.mubr.msk.bf16.vlgmr.msra.gmra.mrb[8].mxu1 %vm142_vm2, %v283_v18 }
 0x2f1   :  { %1342 = vmatprep.mubr.msk.bf16.mxu1 %vm1577_vm0, %v1576_v2 }
 0x3c3   :  { %v344_v1 = vpop.f32.mrb[8].mxu1 }
 0x3c4   :  { %v345_v21 = vadd.f32 %v1182_v0, %v344_v1  ;;  %v1326_v22 = vpop.f32.mrb[9].mxu1 }
 0x3c5   :  { %v347_v23 = vpop.f32.mrb[10].mxu1 }
 0x3c6   :  { %v348_v24 = vadd.f32 %v1182_v0, %v347_v23  ;;  %v1327_v27 = vpop.f32.mrb[11].mxu1  ;;  %v351_v28 = vmax.f32 %v345_v21, 0.0 }
 0x3c8   :  { %v352_v30 = vmax.f32 %v348_v24, 0.0 }
 0x3ca   :  { %v353_v31 = vpack.c.bf16 %v352_v30, %v351_v28 }
 0x3cc   :  { %1337 = vmatmul.mubr.msk.bf16.vlgmr.msra.gmra.mrb[8].mxu0 %vm393_vm4, %v353_v31 }
 0x3cd   :  { %1360 = vmatprep.mubr.msk.bf16.mxu0 %vm1577_vm0, %v1576_v2 }
 0x49f   :  { %v431_v35 = vpop.f32.mrb[8].mxu0 }
 0x4a0   :  { %v1338_v37 = vpop.f32.mrb[9].mxu0  ;;  %v1778_v39 = vadd.f32 %v1186_v34, %v431_v35 }
 0x4a1   :  { %v434_v38 = vpop.f32.mrb[10].mxu0 }
 0x4a2   :  { %v1780_v40 = vadd.f32 %v1186_v34, %v434_v38  ;;  %v1339_v26 = vpop.f32.mrb[11].mxu0 }
 0x4a4   :  { %v438_v41 = vpack.c.bf16 %v1780_v40, %v1778_v39 }
 0x4a6   :  { %1341 = vmatpush3.bf16.msra.mxu1 %v438_v41 }
 0x4a7   :  { %1372 = vmatprep.subr.bf16.mxu1 %v1576_v2 }
 0x4a9   :  { %1343 = vmatmul.mubr.msk.bf16.vlgmr.msra.gmra.mrb[12].mxu1 %vm63_vm1, %v1645_v4 }
 0x4aa   :  { %1346 = vmatprep.mubr.msk.bf16.mxu1 %vm1577_vm0, %v1576_v2 }
 0x4b1   :  { %1347 = vmatmul.mubr.msk.bf16.gmra.mrb[16].mxu1 %vm63_vm1, %v1669_v6 }
 0x4b2   :  { %1350 = vmatprep.mubr.msk.bf16.mxu1 %vm1577_vm0, %v1576_v2 }
 0x4b9   :  { %1351 = vmatmul.mubr.msk.bf16.gmra.mrb[20].mxu1 %vm63_vm1, %v1654_v5 }
 0x4ba   :  { %1380 = vmatprep.mubr.msk.bf16.mxu1 %vm1577_vm0, %v1576_v2 }
 0x57c   :  { %v473_v33 = vpop.f32.mrb[12].mxu1 }
 0x57d   :  { %v1344_v25 = vpop.f32.mrb[13].mxu1  ;;  %v474_v47 = vadd.f32 %v473_v33, %v1678_v7 }
 0x57e   :  { %v476_v42 = vpop.f32.mrb[14].mxu1 }
 0x57f   :  { %v1345_v43 = vpop.f32.mrb[15].mxu1  ;;  %v477_v51 = vadd.f32 %v476_v42, %v1688_v11  ;;  %v496_v55 = vmax.f32 %v474_v47, 0.0 }
 0x581   :  { %v497_v58 = vmax.f32 %v477_v51, 0.0  ;;  %v502_v9 = vadd.f32 1e-07, %v496_v55 }
 0x583   :  { %v503_v15 = vadd.f32 1e-07, %v497_v58  ;;  %v508_v18 = vsel %vm142_vm2, %v502_v9, -inf }
 0x584   :  { %v481_v44 = vpop.f32.mrb[16].mxu1 }
 0x585   :  { %v482_v45 = vadd.f32 %v481_v44, %v1702_v29  ;;  %v1348_v32 = vpop.f32.mrb[17].mxu1  ;;  %v509_v1 = vsel %vm142_vm2, %v503_v15, -inf }
 0x586   :  { %v484_v46 = vpop.f32.mrb[18].mxu1 }
 0x587   :  { %v498_v48 = vmax.f32 %v482_v45, 0.0  ;;  %v485_v49 = vadd.f32 %v484_v46, %v1709_v36  ;;  %v1349_v50 = vpop.f32.mrb[19].mxu1 }
 0x589   :  { %v504_v52 = vadd.f32 1e-07, %v498_v48  ;;  %v499_v54 = vmax.f32 %v485_v49, 0.0 }
 0x58b   :  { %v505_v56 = vadd.f32 1e-07, %v499_v54  ;;  %v510_v59 = vsel %vm142_vm2, %v504_v52, -inf }
 0x58c   :  { %v489_v57 = vpop.f32.mrb[20].mxu1 }
 0x58d   :  { %v511_v60 = vsel %vm142_vm2, %v505_v56, -inf  ;;  %v490_v61 = vadd.f32 %v489_v57, %v1683_v8  ;;  %v1352_v62 = vpop.f32.mrb[21].mxu1 }
 0x58e   :  { %v517_v63 = vmax.f32 %v510_v59, %v511_v60  ;;  %v492_v3 = vpop.f32.mrb[22].mxu1 }
 0x58f   :  { %v500_v10 = vmax.f32 %v490_v61, 0.0  ;;  %v493_v13 = vadd.f32 %v492_v3, %v1693_v12  ;;  %v1353_v14 = vpop.f32.mrb[23].mxu1 }
 0x591   :  { %v506_v16 = vadd.f32 1e-07, %v500_v10  ;;  %v501_v17 = vmax.f32 %v493_v13, 0.0 }
 0x593   :  { %v512_v19 = vsel %vm142_vm2, %v506_v16, -inf  ;;  %v507_v20 = vadd.f32 1e-07, %v501_v17 }
 0x594   :  { %v513_v0 = vmax.f32 %v508_v18, %v512_v19 }
 0x595   :  { %v514_v21 = vsel %vm142_vm2, %v507_v20, -inf }
 0x596   :  { %v515_v22 = vmax.f32 %v509_v1, %v514_v21 }
 0x598   :  { %v516_v23 = vmax.f32 %v513_v0, %v515_v22 }
 0x59a   :  { %v518_v24 = vmax.f32 %v516_v23, %v517_v63 }
 0x59c   :  { %v519_v27 = vrot.slane %v518_v24, 4 }
 0x59e   :  { %v520_v28 = vmax.f32 %v518_v24, %v519_v27 }
 0x5a0   :  { %v521_v30 = vrot.slane %v520_v28, 2 }
 0x5a2   :  { %v522_v31 = vmax.f32 %v520_v28, %v521_v30 }
 0x5a4   :  { %v523_v34 = vrot.slane %v522_v31, 1 }
 0x5a6   :  { %v524_v35 = vmax.f32 %v522_v31, %v523_v34  ;;  %v1492_v31 = vld [vmem:[%s1964_s4 + $0x10] sm:$0xff]  }
 0x5a8   :  { %v530_v37 = vsub.f32 %v507_v20, %v524_v35  ;;  %v527_v38 = vsub.f32 %v504_v52, %v524_v35  ;;  %v528_v26 = vsub.f32 %v505_v56, %v524_v35  ;;  %v525_v41 = vsub.f32 %v502_v9, %v524_v35 }
 0x5a9   :  { %v526_v33 = vsub.f32 %v503_v15, %v524_v35  ;;  %v529_v25 = vsub.f32 %v506_v16, %v524_v35 }
 0x5aa   :  { %v541_v42 = vmul.f32 1.442695, %v530_v37  ;;  %v535_v43 = vmul.f32 1.442695, %v527_v38  ;;  %v537_v44 = vmul.f32 1.442695, %v528_v26 }
 0x5ab   :  { %v531_v45 = vmul.f32 1.442695, %v525_v41  ;;  %v533_v32 = vmul.f32 1.442695, %v526_v33  ;;  %v539_v46 = vmul.f32 1.442695, %v529_v25 }
 0x5ac   :  { %1520 = vpow2.f32 %v541_v42  ;;  %v1493_v38 = vld [vmem:[%s1964_s4 + $0x18] sm:$0xff]   ;;  %v1494_v26 = vld [vmem:[%s1966_s6 + $0x20] sm:$0xff]   ;;  %v1495_v41 = vld [vmem:[%s1966_s6 + $0x28] sm:$0xff]  }
 0x5ad   :  { %1522 = vpow2.f32 %v535_v43  ;;  %1373 = vmatpush3.bf16.msra.mxu1 %v1494_v26 }
 0x5ae   :  { %1524 = vpow2.f32 %v537_v44  ;;  %1374 = vmatprep.subr.bf16.mxu1 %v1576_v2 }
 0x5af   :  { %1526 = vpow2.f32 %v531_v45 }
 0x5b0   :  { %1528 = vpow2.f32 %v533_v32 }
 0x5b1   :  { %1530 = vpow2.f32 %v539_v46  ;;  %1375 = vmatpush3.bf16.msra.mxu1 %v1495_v41 }
 0x5b2   :  { %1376 = vmatprep.subr.bf16.mxu1 %v1576_v2 }
 0x5b6   :  { %v1521_v47 = vpop.eup %1520 }
 0x5b7   :  { %v1523_v48 = vpop.eup %1522  ;;  %v548_v49 = vmul.f32 %v1521_v47, %v507_v20 }
 0x5b8   :  { %v1525_v50 = vpop.eup %1524  ;;  %v545_v51 = vmul.f32 %v1523_v48, %v504_v52 }
 0x5b9   :  { %v1527_v54 = vpop.eup %1526  ;;  %v1457_v55 = vpack.i.bf16 %v1525_v50, %v1523_v48  ;;  %v546_v57 = vmul.f32 %v1525_v50, %v505_v56  ;;  %v1496_v48 = vld [vmem:[%s1966_s6 + $0x30] sm:$0xff]  }
 0x5ba   :  { %v1529_v58 = vpop.eup %1528  ;;  %v543_v59 = vmul.f32 %v1527_v54, %v502_v9  ;;  %1377 = vmatpush3.bf16.msra.mxu1 %v1496_v48 }
 0x5bb   :  { %v1531_v60 = vpop.eup %1530  ;;  %1458 = vrot.lane.b32.xlu0 %v1457_v55, %s1578_s1  ;;  %v1452_v61 = vpack.i.bf16 %v1529_v58, %v1527_v54  ;;  %v544_v62 = vmul.f32 %v1529_v58, %v503_v15  ;;  %1378 = vmatprep.subr.bf16.mxu1 %v1576_v2 }
 0x5bc   :  { %v1462_v63 = vpack.i.bf16 %v1521_v47, %v1531_v60  ;;  %v547_v3 = vmul.f32 %v1531_v60, %v506_v16 }
 0x5bd   :  { %1453 = vrot.lane.b32.xlu1 %v1452_v61, %s1578_s1  ;;  %v1214_v61 = vld [vmem:[%s1967_s7 + $0x1] ss:$0 sm:$0xff] }
 0x5c1   :  { %1463 = vrot.lane.b32.xlu1 %v1462_v63, %s1578_s1 }
 0x62d   :  { %v1459_v10 = vpop.permute.xlu0 %1458 }
 0x62e   :  { %v1461_v13 = vunpack.i.h.bf16 %v1459_v10  ;;  %v1460_v14 = vunpack.i.l.bf16 %v1459_v10 }
 0x62f   :  { %v1454_v52 = vpop.permute.xlu1 %1453 }
 0x630   :  { %v576_v17 = vsel %vm142_vm2, %v546_v57, %v1461_v13  ;;  %v575_v56 = vsel %vm142_vm2, %v545_v51, %v1460_v14  ;;  %v1456_v9 = vunpack.i.h.bf16 %v1454_v52  ;;  %v1455_v18 = vunpack.i.l.bf16 %v1454_v52 }
 0x631   :  { %v580_v19 = vpack.c.bf16 %v576_v17, %v575_v56 }
 0x632   :  { %v574_v20 = vsel %vm142_vm2, %v544_v62, %v1456_v9  ;;  %v573_v15 = vsel %vm142_vm2, %v543_v59, %v1455_v18 }
 0x633   :  { %v579_v16 = vpack.c.bf16 %v574_v20, %v573_v15  ;;  %v1464_v0 = vpop.permute.xlu1 %1463 }
 0x634   :  { %v1466_v1 = vunpack.i.h.bf16 %v1464_v0  ;;  %v1465_v21 = vunpack.i.l.bf16 %v1464_v0 }
 0x635   :  { %1355 = vmatpush3.bf16.msra.mxu0 %v579_v16 }
 0x636   :  { %v578_v22 = vsel %vm142_vm2, %v548_v49, %v1466_v1  ;;  %v577_v23 = vsel %vm142_vm2, %v547_v3, %v1465_v21  ;;  %1356 = vmatprep.subr.bf16.mxu0 %v1576_v2  ;;  %v1497_v49 = vld [vmem:[%s1966_s6 + $0x38] sm:$0xff]  }
 0x637   :  { %v581_v24 = vpack.c.bf16 %v578_v22, %v577_v23  ;;  %1379 = vmatpush3.bf16.msra.mxu1 %v1497_v49 }
 0x638   :  { %1398 = vmatprep.subr.bf16.mxu1 %v1576_v2 }
 0x639   :  { %1357 = vmatpush3.bf16.msra.mxu0 %v580_v19 }
 0x63a   :  { %1358 = vmatprep.subr.bf16.mxu0 %v1576_v2 }
 0x63d   :  { %1359 = vmatpush3.bf16.msra.mxu0 %v581_v24 }
 0x63e   :  { %1364 = vmatprep.subr.bf16.mxu0 %v1576_v2 }
 0x640   :  { %1361 = vmatmul.mubr.msk.bf16.vlgmr.msra.gmra.mrb[12].mxu0 %vm222_vm3, %v1731_v53 }
 0x641   :  { %1368 = vmatprep.mubr.msk.bf16.mxu0 %vm1577_vm0, %v1576_v2  ;;  %1365 = vmatpush3.bf16.msra.mxu0 %v1492_v31 }
 0x642   :  { %1366 = vmatprep.subr.bf16.mxu0 %v1576_v2 }
 0x645   :  { %1367 = vmatpush3.bf16.msra.mxu0 %v1493_v38 }
 0x646   :  { %1384 = vmatprep.subr.bf16.mxu0 %v1576_v2 }
 0x713   :  { %v616_v27 = vpop.f32.mrb[12].mxu0 }
 0x714   :  { %v623_v28 = vmax.f32 %v616_v27, 1e-30  ;;  %v1362_v30 = vpop.f32.mrb[13].mxu0 }
 0x715   :  { %v619_v34 = vpop.f32.mrb[14].mxu0 }
 0x716   :  { %1532 = vrcp.f32 %v623_v28  ;;  %v624_v35 = vmax.f32 %v619_v34, 1e-30  ;;  %v1363_v37 = vpop.f32.mrb[15].mxu0 }
 0x718   :  { %1534 = vrcp.f32 %v624_v35 }
 0x720   :  { %v1533_v33 = vpop.eup %1532 }
 0x721   :  { %629 = vrot.lane.b32.xlu0 %v1533_v33, %s1579_s11 }
 0x722   :  { %v1535_v25 = vpop.eup %1534 }
 0x723   :  { %631 = vrot.lane.b32.xlu1 %v1535_v25, %s1579_s11 }
 0x793   :  { %v630_v42 = vpop.permute.xlu0 %629 }
 0x794   :  { %v635_v43 = vmul.f32 %v630_v42, %v616_v27 }
 0x795   :  { %v632_v44 = vpop.permute.xlu1 %631 }
 0x796   :  { %v636_v45 = vmul.f32 %v632_v44, %v619_v34  ;;  %v637_v32 = vadd.f32 %v635_v43, %v1778_v39  ;;  %v1201_v39 = vld [vmem:[%s1965_s5 + $0x1] ss:$0 sm:$0xff] }
 0x798   :  { %v638_v46 = vadd.f32 %v636_v45, %v1780_v40 }
 0x79a   :  { %v639_v47 = vpack.c.bf16 %v638_v46, %v637_v32 }
 0x79c   :  { %1369 = vmatmul.mubr.msk.bf16.vlgmr.msra.gmra.mrb[16].mxu0 %vm142_vm2, %v639_v47 }
 0x79d   :  { %1386 = vmatprep.mubr.msk.bf16.mxu0 %vm1577_vm0, %v1576_v2 }
 0x86f   :  { %v702_v40 = vpop.f32.mrb[16].mxu0 }
 0x870   :  { %v703_v50 = vadd.f32 %v1201_v39, %v702_v40  ;;  %v1370_v51 = vpop.f32.mrb[17].mxu0 }
 0x871   :  { %v705_v54 = vpop.f32.mrb[18].mxu0 }
 0x872   :  { %v706_v55 = vadd.f32 %v1201_v39, %v705_v54  ;;  %v1371_v57 = vpop.f32.mrb[19].mxu0  ;;  %v709_v58 = vmax.f32 %v703_v50, 0.0 }
 0x874   :  { %v710_v59 = vmax.f32 %v706_v55, 0.0 }
 0x876   :  { %v711_v60 = vpack.c.bf16 %v710_v59, %v709_v58 }
 0x878   :  { %1381 = vmatmul.mubr.msk.bf16.vlgmr.msra.gmra.mrb[24].mxu1 %vm393_vm4, %v711_v60 }
 0x879   :  { %1404 = vmatprep.mubr.msk.bf16.mxu1 %vm1577_vm0, %v1576_v2 }
 0x94b   :  { %v790_v62 = vpop.f32.mrb[24].mxu1 }
 0x94c   :  { %v1382_v63 = vpop.f32.mrb[25].mxu1  ;;  %v1865_v10 = vadd.f32 %v1214_v61, %v790_v62 }
 0x94d   :  { %v793_v3 = vpop.f32.mrb[26].mxu1 }
 0x94e   :  { %v1867_v13 = vadd.f32 %v1214_v61, %v793_v3  ;;  %v1383_v14 = vpop.f32.mrb[27].mxu1 }
 0x950   :  { %v797_v52 = vpack.c.bf16 %v1867_v13, %v1865_v10 }
 0x952   :  { %1385 = vmatpush3.bf16.msra.mxu0 %v797_v52 }
 0x953   :  { %1416 = vmatprep.subr.bf16.mxu0 %v1576_v2 }
 0x955   :  { %1387 = vmatmul.mubr.msk.bf16.vlgmr.msra.gmra.mrb[20].mxu0 %vm63_vm1, %v1645_v4 }
 0x956   :  { %1390 = vmatprep.mubr.msk.bf16.mxu0 %vm1577_vm0, %v1576_v2 }
 0x95d   :  { %1391 = vmatmul.mubr.msk.bf16.gmra.mrb[24].mxu0 %vm63_vm1, %v1669_v6 }
 0x95e   :  { %1394 = vmatprep.mubr.msk.bf16.mxu0 %vm1577_vm0, %v1576_v2 }
 0x965   :  { %1395 = vmatmul.mubr.msk.bf16.gmra.mrb[28].mxu0 %vm63_vm1, %v1654_v5 }
 0x966   :  { %1424 = vmatprep.mubr.msk.bf16.mxu0 %vm1577_vm0, %v1576_v2 }
 0xa28   :  { %v832_v17 = vpop.f32.mrb[20].mxu0 }
 0xa29   :  { %v1388_v56 = vpop.f32.mrb[21].mxu0  ;;  %v833_v6 = vadd.f32 %v832_v17, %v1678_v7 }
 0xa2a   :  { %v835_v9 = vpop.f32.mrb[22].mxu0 }
 0xa2b   :  { %v1389_v18 = vpop.f32.mrb[23].mxu0  ;;  %v836_v5 = vadd.f32 %v835_v9, %v1688_v11  ;;  %v855_v23 = vmax.f32 %v833_v6, 0.0 }
 0xa2d   :  { %v856_v28 = vmax.f32 %v836_v5, 0.0  ;;  %v861_v37 = vadd.f32 1e-07, %v855_v23 }
 0xa2f   :  { %v862_v26 = vadd.f32 1e-07, %v856_v28  ;;  %v867_v25 = vsel %vm142_vm2, %v861_v37, -inf }
 0xa30   :  { %v840_v4 = vpop.f32.mrb[24].mxu0 }
 0xa31   :  { %v841_v19 = vadd.f32 %v840_v4, %v1702_v29  ;;  %v1392_v20 = vpop.f32.mrb[25].mxu0  ;;  %v868_v45 = vsel %vm142_vm2, %v862_v26, -inf }
 0xa32   :  { %v843_v15 = vpop.f32.mrb[26].mxu0 }
 0xa33   :  { %v857_v16 = vmax.f32 %v841_v19, 0.0  ;;  %v844_v0 = vadd.f32 %v843_v15, %v1709_v36  ;;  %v1393_v1 = vpop.f32.mrb[27].mxu0 }
 0xa35   :  { %v863_v21 = vadd.f32 1e-07, %v857_v16  ;;  %v858_v22 = vmax.f32 %v844_v0, 0.0 }
 0xa37   :  { %v864_v24 = vadd.f32 1e-07, %v858_v22  ;;  %v869_v30 = vsel %vm142_vm2, %v863_v21, -inf }
 0xa38   :  { %v848_v27 = vpop.f32.mrb[28].mxu0 }
 0xa39   :  { %v870_v29 = vsel %vm142_vm2, %v864_v24, -inf  ;;  %v849_v31 = vadd.f32 %v848_v27, %v1683_v8  ;;  %v1396_v34 = vpop.f32.mrb[29].mxu0 }
 0xa3a   :  { %v876_v7 = vmax.f32 %v869_v30, %v870_v29  ;;  %v851_v35 = vpop.f32.mrb[30].mxu0 }
 0xa3b   :  { %v859_v36 = vmax.f32 %v849_v31, 0.0  ;;  %v852_v38 = vadd.f32 %v851_v35, %v1693_v12  ;;  %v1397_v11 = vpop.f32.mrb[31].mxu0 }
 0xa3d   :  { %v865_v41 = vadd.f32 1e-07, %v859_v36  ;;  %v860_v33 = vmax.f32 %v852_v38, 0.0 }
 0xa3f   :  { %v871_v42 = vsel %vm142_vm2, %v865_v41, -inf  ;;  %v866_v43 = vadd.f32 1e-07, %v860_v33 }
 0xa40   :  { %v872_v44 = vmax.f32 %v867_v25, %v871_v42 }
 0xa41   :  { %v873_v8 = vsel %vm142_vm2, %v866_v43, -inf }
 0xa42   :  { %v874_v32 = vmax.f32 %v868_v45, %v873_v8 }
 0xa44   :  { %v875_v46 = vmax.f32 %v872_v44, %v874_v32  ;;  %v1498_v44 = vld [vmem:[%s1964_s4 + $0x20] sm:$0xff]  }
 0xa46   :  { %v877_v47 = vmax.f32 %v875_v46, %v876_v7  ;;  %v1500_v46 = vld [vmem:[%s1966_s6 + $0x40] sm:$0xff]  }
 0xa47   :  { %1417 = vmatpush3.bf16.msra.mxu0 %v1500_v46 }
 0xa48   :  { %v878_v48 = vrot.slane %v877_v47, 4  ;;  %1418 = vmatprep.subr.bf16.mxu0 %v1576_v2 }
 0xa4a   :  { %v879_v49 = vmax.f32 %v877_v47, %v878_v48  ;;  %v1501_v47 = vld [vmem:[%s1966_s6 + $0x48] sm:$0xff]  }
 0xa4b   :  { %1419 = vmatpush3.bf16.msra.mxu0 %v1501_v47 }
 0xa4c   :  { %v880_v12 = vrot.slane %v879_v49, 2  ;;  %1420 = vmatprep.subr.bf16.mxu0 %v1576_v2 }
 0xa4e   :  { %v881_v39 = vmax.f32 %v879_v49, %v880_v12 }
 0xa50   :  { %v882_v40 = vrot.slane %v881_v39, 1 }
 0xa52   :  { %v883_v50 = vmax.f32 %v881_v39, %v882_v40 }
 0xa54   :  { %v889_v51 = vsub.f32 %v866_v43, %v883_v50  ;;  %v886_v54 = vsub.f32 %v863_v21, %v883_v50  ;;  %v887_v55 = vsub.f32 %v864_v24, %v883_v50  ;;  %v884_v57 = vsub.f32 %v861_v37, %v883_v50 }
 0xa55   :  { %v885_v58 = vsub.f32 %v862_v26, %v883_v50  ;;  %v888_v59 = vsub.f32 %v865_v41, %v883_v50 }
 0xa56   :  { %v900_v60 = vmul.f32 1.442695, %v889_v51  ;;  %v894_v61 = vmul.f32 1.442695, %v886_v54  ;;  %v896_v62 = vmul.f32 1.442695, %v887_v55 }
 0xa57   :  { %v890_v63 = vmul.f32 1.442695, %v884_v57  ;;  %v892_v3 = vmul.f32 1.442695, %v885_v58  ;;  %v898_v14 = vmul.f32 1.442695, %v888_v59 }
 0xa58   :  { %1536 = vpow2.f32 %v900_v60  ;;  %v1502_v57 = vld [vmem:[%s1966_s6 + $0x50] sm:$0xff]   ;;  %v1503_v58 = vld [vmem:[%s1966_s6 + $0x58] sm:$0xff]   ;;  %s1580_s6 = smov [#allocation2]  }
 0xa59   :  { %1538 = vpow2.f32 %v894_v61  ;;  %1421 = vmatpush3.bf16.msra.mxu0 %v1502_v57  ;;  %s1163_s24 = sshll.u32 %s1580_s6, 4  ;;  %s1164_s24 = int_to_ptr.vmem [resolvable:$true] %s1163_s24 }
 0xa5a   :  { %1540 = vpow2.f32 %v896_v62  ;;  %1422 = vmatprep.subr.bf16.mxu0 %v1576_v2  ;;  %p1557_p1 = scmp.lt.s32.totalorder %s1164_s24, %s1164_s24 }
 0xa5b   :  { %1542 = vpow2.f32 %v890_v63 }
 0xa5c   :  { %1544 = vpow2.f32 %v892_v3 }
 0xa5d   :  { %1546 = vpow2.f32 %v898_v14  ;;  %1423 = vmatpush3.bf16.msra.mxu0 %v1503_v58 }
 0xa62   :  { %v1537_v52 = vpop.eup %1536 }
 0xa63   :  { %v1539_v17 = vpop.eup %1538  ;;  %v907_v56 = vmul.f32 %v1537_v52, %v866_v43 }
 0xa64   :  { %v1541_v9 = vpop.eup %1540  ;;  %v904_v18 = vmul.f32 %v1539_v17, %v863_v21 }
 0xa65   :  { %v1543_v4 = vpop.eup %1542  ;;  %v1472_v19 = vpack.i.bf16 %v1541_v9, %v1539_v17  ;;  %v905_v20 = vmul.f32 %v1541_v9, %v864_v24 }
 0xa66   :  { %v1545_v15 = vpop.eup %1544  ;;  %v902_v6 = vmul.f32 %v1543_v4, %v861_v37 }
 0xa67   :  { %v1547_v16 = vpop.eup %1546  ;;  %1473 = vrot.lane.b32.xlu1 %v1472_v19, %s1578_s1  ;;  %v1467_v0 = vpack.i.bf16 %v1545_v15, %v1543_v4  ;;  %v903_v1 = vmul.f32 %v1545_v15, %v862_v26 }
 0xa68   :  { %v1477_v5 = vpack.i.bf16 %v1537_v52, %v1547_v16  ;;  %v906_v22 = vmul.f32 %v1547_v16, %v865_v41 }
 0xa69   :  { %1468 = vrot.lane.b32.xlu0 %v1467_v0, %s1578_s1 }
 0xa6d   :  { %1478 = vrot.lane.b32.xlu0 %v1477_v5, %s1578_s1 }
 0xad9   :  { %v1474_v23 = vpop.permute.xlu1 %1473 }
 0xada   :  { %v1476_v27 = vunpack.i.h.bf16 %v1474_v23  ;;  %v1475_v28 = vunpack.i.l.bf16 %v1474_v23 }
 0xadb   :  { %v1469_v21 = vpop.permute.xlu0 %1468 }
 0xadc   :  { %v935_v30 = vsel %vm142_vm2, %v905_v20, %v1476_v27  ;;  %v934_v24 = vsel %vm142_vm2, %v904_v18, %v1475_v28  ;;  %v1471_v29 = vunpack.i.h.bf16 %v1469_v21  ;;  %v1470_v31 = vunpack.i.l.bf16 %v1469_v21 }
 0xadd   :  { %v939_v34 = vpack.c.bf16 %v935_v30, %v934_v24 }
 0xade   :  { %v933_v7 = vsel %vm142_vm2, %v903_v1, %v1471_v29  ;;  %v932_v35 = vsel %vm142_vm2, %v902_v6, %v1470_v31 }
 0xadf   :  { %v938_v37 = vpack.c.bf16 %v933_v7, %v932_v35  ;;  %v1479_v36 = vpop.permute.xlu0 %1478 }
 0xae0   :  { %v1481_v38 = vunpack.i.h.bf16 %v1479_v36  ;;  %v1480_v11 = vunpack.i.l.bf16 %v1479_v36 }
 0xae1   :  { %1399 = vmatpush3.bf16.msra.mxu1 %v938_v37 }
 0xae2   :  { %v937_v26 = vsel %vm142_vm2, %v907_v56, %v1481_v38  ;;  %v936_v41 = vsel %vm142_vm2, %v906_v22, %v1480_v11  ;;  %1400 = vmatprep.subr.bf16.mxu1 %v1576_v2 }
 0xae3   :  { %v940_v33 = vpack.c.bf16 %v937_v26, %v936_v41 }
 0xae5   :  { %1401 = vmatpush3.bf16.msra.mxu1 %v939_v34 }
 0xae6   :  { %1402 = vmatprep.subr.bf16.mxu1 %v1576_v2 }
 0xae9   :  { %1403 = vmatpush3.bf16.msra.mxu1 %v940_v33 }
 0xaea   :  { %1408 = vmatprep.subr.bf16.mxu1 %v1576_v2 }
 0xaec   :  { %1405 = vmatmul.mubr.msk.bf16.vlgmr.msra.gmra.mrb[28].mxu1 %vm222_vm3, %v1731_v53  ;;  %v1499_v53 = vld [vmem:[%s1964_s4 + $0x28] sm:$0xff]  }
 0xaed   :  { %1412 = vmatprep.mubr.msk.bf16.mxu1 %vm1577_vm0, %v1576_v2  ;;  %1409 = vmatpush3.bf16.msra.mxu1 %v1498_v44 }
 0xaee   :  { %1410 = vmatprep.subr.bf16.mxu1 %v1576_v2  ;;  %v1242_v2 = vld [vmem:[%s1967_s7 + $0x2] ss:$0 sm:$0xff] }
 0xaf1   :  { %1411 = vmatpush3.bf16.msra.mxu1 %v1499_v53 }
 0xbbf   :  { %v975_v25 = vpop.f32.mrb[28].mxu1 }
 0xbc0   :  { %v982_v42 = vmax.f32 %v975_v25, 1e-30  ;;  %v1406_v43 = vpop.f32.mrb[29].mxu1 }
 0xbc1   :  { %v978_v45 = vpop.f32.mrb[30].mxu1 }
 0xbc2   :  { %1548 = vrcp.f32 %v982_v42  ;;  %v983_v8 = vmax.f32 %v978_v45, 1e-30  ;;  %v1407_v32 = vpop.f32.mrb[31].mxu1 }
 0xbc4   :  { %1550 = vrcp.f32 %v983_v8 }
 0xbcc   :  { %v1549_v48 = vpop.eup %1548 }
 0xbcd   :  { %988 = vrot.lane.b32.xlu1 %v1549_v48, %s1579_s11 }
 0xbce   :  { %v1551_v49 = vpop.eup %1550 }
 0xbcf   :  { %990 = vrot.lane.b32.xlu0 %v1551_v49, %s1579_s11 }
 0xc3f   :  { %v989_v12 = vpop.permute.xlu1 %988 }
 0xc40   :  { %v994_v39 = vmul.f32 %v989_v12, %v975_v25 }
 0xc41   :  { %v991_v40 = vpop.permute.xlu0 %990 }
 0xc42   :  { %v995_v50 = vmul.f32 %v991_v40, %v978_v45  ;;  %v996_v51 = vadd.f32 %v994_v39, %v1865_v10  ;;  %v1229_v10 = vld [vmem:[%s1965_s5 + $0x2] ss:$0 sm:$0xff]  ;;  %s1552_s5 = scalar_lea.vmem %s1164_s24, 256 }
 0xc43   :  { %p1553_p0 = scmp.ne.s32.totalorder %s1164_s24, %s1552_s5  ;;  %p1558_p2 = scmp.lt.s32.totalorder %s1552_s5, %s1552_s5 }
 0xc44   :  { %v997_v54 = vadd.f32 %v995_v50, %v1867_v13 }
 0xc45   :  { %p1559_p3 = por %p1558_p2, %p1557_p1 }
 0xc46   :  { %v998_v55 = vpack.c.bf16 %v997_v54, %v996_v51 }
 0xc47   :  { %p1560_p4 = pnand %p1559_p3, %p1553_p0 }
 0xc48   :  { %1413 = vmatmul.mubr.msk.bf16.vlgmr.msra.gmra.mrb[32].mxu1 %vm142_vm2, %v998_v55 }
 0xd1b   :  { %v1061_v13 = vpop.f32.mrb[32].mxu1 }
 0xd1c   :  { %v1062_v59 = vadd.f32 %v1229_v10, %v1061_v13  ;;  %v1414_v60 = vpop.f32.mrb[33].mxu1 }
 0xd1d   :  { %v1064_v61 = vpop.f32.mrb[34].mxu1 }
 0xd1e   :  { %v1065_v62 = vadd.f32 %v1229_v10, %v1064_v61  ;;  %v1415_v63 = vpop.f32.mrb[35].mxu1  ;;  %v1068_v3 = vmax.f32 %v1062_v59, 0.0 }
 0xd20   :  { %v1069_v14 = vmax.f32 %v1065_v62, 0.0 }
 0xd22   :  { %v1070_v52 = vpack.c.bf16 %v1069_v14, %v1068_v3 }
 0xd24   :  { %1425 = vmatmul.mubr.msk.bf16.vlgmr.msra.gmra.mrb[32].mxu0 %vm393_vm4, %v1070_v52 }
 0xdf7   :  { %v1149_v17 = vpop.f32.mrb[32].mxu0 }
 0xdf8   :  { %v1150_v56 = vadd.f32 %v1242_v2, %v1149_v17  ;;  %v1426_v9 = vpop.f32.mrb[33].mxu0 }
 0xdf9   :  { %v1152_v18 = vpop.f32.mrb[34].mxu0 }
 0xdfa   :  { %1156 = vst.msk [vmem:[#allocation2] sm:$0xff] %vm142_vm2, %v1150_v56  ;;  %v1153_v4 = vadd.f32 %v1242_v2, %v1152_v18  ;;  %v1427_v19 = vpop.f32.mrb[35].mxu0 }
 0xdfc   :  { %1157 = vst.msk [vmem:[#allocation2 + $0x8] sm:$0xff] %vm142_vm2, %v1153_v4 }
 0xdfd   :  { %1563 = shalt.err (!%p1560_p4)
}
 0xdfe   :  { %s1564_s26 = scalar_lea.hbm %s1968_s8, 256 }
 0xdff   :  { %p1565_p5 = scmp.ne.s32.totalorder %s1968_s8, %s1564_s26  ;;  %p1568_p6 = scmp.lt.u32.totalorder %s1564_s26, %s1968_s8 }
 0xe01   :  { %p1570_p7 = pnand %p1568_p6, %p1565_p5 }
 0xe03   :  { %1573 = shalt.err (!%p1570_p7)
}
 0xe04   :  { %s1581_s30 = smov 128   ;;  %s1582_s9 = smov 8  }
 0xe05   :  { %1169 = dma.vmem_to_hbm [thread:$0]  %s1164_s24, 256, %s1968_s8, [#allocation3], %s1581_s30, %s1581_s30, %s1582_s9  }
 0xe06   :  { %1574 = dma.done.wait [#allocation3], 256  }
 0xe07   :  { %1575 = vsyncadd [#allocation3], 4294967040 }
 0xe08   :  { %1173 = vsyncpa [#allocation3], 1 }

</bundles_post_ra>
